<compile_context>
chip_gen: v6e
topology: v6e:2x2x1
jax: 0.10.0
libtpu: 0.0.40
codegen_flags: <defaults>
</compile_context>

<pallas_src>
import functools

import jax
import jax.numpy as jnp
import numpy as np
from jax.experimental import pallas as pl
from jax.experimental.pallas import tpu as pltpu


def se_conv_kernel(x_ref, w_ref, bc_ref, w1_ref, w2_ref, mask_ref, pool_ref,
                   o_ref, col_ref, y_ref, *, nb, hw_pad, kh, kw, img_w, cin_pad):
    # x_ref   : [nb, Cin_pad, HW_pad]       raw NCHW activation, matmul dtype
    # w_ref   : [Cout, KH*KW*Cin_pad]       fused conv weight (tap-major), matmul dtype
    # bc_ref  : [Cout, 1]                   conv bias (f32)
    # w1_ref  : [latent, Cout]              SE linear 1 (PyTorch layout, f32)
    # w2_ref  : [Cout, latent]              SE linear 2 (PyTorch layout, f32)
    # mask_ref: [KH*KW, 1, HW_pad]          precomputed 'same'-padding border masks
    # pool_ref: [nb*HW_pad, nb]             block-diagonal 1/HW pooling matrix (f32)
    # o_ref   : [nb, Cout, HW_pad]          lane-dense output (== NCHW flattened)
    # col_ref : [KH*KW*Cin_pad, nb*HW_pad]  im2col VMEM scratch (matmul dtype)
    # y_ref   : [Cout, nb*HW_pad]           f32 conv-output scratch
    k2 = kh * kw

    # 1) In-kernel im2col: shifted views via lane rolls (XLU slot), zeroed at image
    #    borders by the precomputed masks, packed into one lane-dense scratch.
    for b in range(nb):
        xb = x_ref[b]                                            # [Cin_pad, HW_pad]
        for t in range(k2):
            di = t // kw - kh // 2
            dj = t % kw - kw // 2
            off = di * img_w + dj
            xs = xb if off == 0 else pltpu.roll(xb, shift=(-off) % hw_pad, axis=1)
            if di != 0 or dj != 0:
                xs = xs * mask_ref[t]                            # [1, HW_pad] broadcast
            col_ref[t * cin_pad:(t + 1) * cin_pad,
                    b * hw_pad:(b + 1) * hw_pad] = xs

    # 2) Conv as ONE fused MXU matmul (contraction depth KH*KW*Cin_pad), f32 acc,
    #    bias folded in, written to an explicit f32 VMEM scratch.
    y_ref[...] = jnp.dot(w_ref[...], col_ref[...],
                         preferred_element_type=jnp.float32) + bc_ref[...]

    # 3) Squeeze: per-image global average pool as a matmul against a block-diagonal
    #    1/HW matrix -> [Cout, nb].
    pooled = jnp.dot(y_ref[...], pool_ref[...], preferred_element_type=jnp.float32)

    # 4) Excite: single-hidden-layer MLP + sigmoid (f32 throughout).
    hidden = jnp.maximum(
        jnp.dot(w1_ref[...], pooled, preferred_element_type=jnp.float32), 0.0)
    scale = jax.nn.sigmoid(
        jnp.dot(w2_ref[...], hidden, preferred_element_type=jnp.float32))   # [Cout, nb]

    # 5) Per-channel rescale; every store is a full-lane-width (unmasked) vst.
    for b in range(nb):
        o_ref[b] = (y_ref[:, b * hw_pad:(b + 1) * hw_pad]
                    * scale[:, b:b + 1]).astype(o_ref.dtype)


def squeeze_excite_conv2d(x, conv_w, conv_b, w1, w2, *, matmul_dtype=None, nb=None):
    # x: [N, Cin, H, W] (NCHW, like PyTorch)
    # conv_w: [Cout, Cin, KH, KW], conv_b: [Cout]
    # w1: [latent, Cout] (PyTorch Linear layout), w2: [Cout, latent]
    # matmul_dtype: optional MXU operand dtype (jnp.bfloat16 recommended on v6e/v7x);
    #               accumulation / pooling / sigmoid / rescale stay in f32.
    n, cin, h, w = x.shape
    cout, _, kh, kw = conv_w.shape
    latent = w1.shape[0]
    hw = h * w
    hw_pad = ((hw + 127) // 128) * 128                      # lane axis: multiple of 128
    out_dtype = x.dtype
    mdt = jnp.dtype(x.dtype if matmul_dtype is None else matmul_dtype)
    pack = max(1, 4 // mdt.itemsize) * 8                    # sublane packing: 8 f32 / 16 bf16
    cin_pad = ((cin + pack - 1) // pack) * pack
    k2 = kh * kw
    out_isz = jnp.dtype(out_dtype).itemsize

    # --- host-side prep (layout plumbing, no per-step compute in the kernel) ---
    # Activation: [N, Cin_pad, HW_pad], zero padded, matmul dtype. Lane axis = HW_pad.
    x_flat = x.reshape(n, cin, hw)
    x_flat = jnp.pad(x_flat, ((0, 0), (0, cin_pad - cin), (0, hw_pad - hw))).astype(mdt)

    # Fused conv weight [Cout, K*Cin_pad]: column t*Cin_pad + c == conv_w[:, c, ki, kj].
    w_taps = conv_w.transpose(2, 3, 0, 1).reshape(k2, cout, cin)      # [K, Cout, Cin]
    w_taps = jnp.pad(w_taps, ((0, 0), (0, 0), (0, cin_pad - cin)))
    w_fused = w_taps.transpose(1, 0, 2).reshape(cout, k2 * cin_pad).astype(mdt)

    bc = conv_b.reshape(cout, 1).astype(jnp.float32)
    w1_f = w1.astype(jnp.float32)
    w2_f = w2.astype(jnp.float32)

    # Grid-invariant border masks (one per tap), computed once on the host.
    pos = np.arange(hw_pad)
    row, col = pos // w, pos % w
    masks_np = np.zeros((k2, 1, hw_pad), dtype=np.float32)
    for t in range(k2):
        di, dj = t // kw - kh // 2, t % kw - kw // 2
        valid = ((row + di >= 0) & (row + di < h) &
                 (col + dj >= 0) & (col + dj < w) & (pos < hw))
        masks_np[t, 0] = valid.astype(np.float32)
    masks = jnp.asarray(masks_np, dtype=mdt)

    # Batch tile size: largest divisor of N whose per-step block fits a ~8 MiB budget.
    if nb is None:
        per_img = hw_pad * (cin_pad * mdt.itemsize            # x block
                            + k2 * cin_pad * mdt.itemsize     # im2col scratch
                            + cout * out_isz                  # out block
                            + cout * 4)                       # f32 y scratch
        nb = 1
        for d in range(1, n + 1):
            if n % d == 0 and d * per_img <= (8 << 20):
                nb = d
    assert n % nb == 0, "nb must divide the batch size"

    # Block-diagonal pooling matrix: pool_m[b*HW_pad + p, b] = 1/HW for p < HW.
    pool_np = np.zeros((nb * hw_pad, nb), dtype=np.float32)
    for b in range(nb):
        pool_np[b * hw_pad: b * hw_pad + hw, b] = 1.0 / hw
    pool_m = jnp.asarray(pool_np)

    # VMEM budget (double-buffered in/out blocks + single-buffer scratches) and cost hint.
    x_blk = nb * cin_pad * hw_pad * mdt.itemsize
    o_blk = nb * cout * hw_pad * out_isz
    col_b = k2 * cin_pad * nb * hw_pad * mdt.itemsize
    y_b = cout * nb * hw_pad * 4
    const_b = (cout * k2 * cin_pad * mdt.itemsize + cout * 4 + latent * cout * 4
               + cout * latent * 4 + k2 * hw_pad * mdt.itemsize + nb * hw_pad * nb * 4)
    vmem_limit = int(min(max(2 * (x_blk + o_blk + const_b) + col_b + y_b + (2 << 20),
                             16 << 20), 48 << 20))

    flops = n * (2 * k2 * cin * cout * hw + 2 * cout * hw
                 + 4 * latent * cout + cout * hw)
    bytes_accessed = (n * cin_pad * hw_pad * mdt.itemsize + n * cout * hw_pad * out_isz
                      + const_b)
    cost = pl.CostEstimate(flops=int(flops), transcendentals=int(n * cout),
                           bytes_accessed=int(bytes_accessed))

    kernel = functools.partial(se_conv_kernel, nb=nb, hw_pad=hw_pad, kh=kh, kw=kw,
                               img_w=w, cin_pad=cin_pad)

    out = pl.pallas_call(
        kernel,
        out_shape=jax.ShapeDtypeStruct((n, cout, hw_pad), out_dtype),
        grid_spec=pltpu.PrefetchScalarGridSpec(
            num_scalar_prefetch=0,
            grid=(n // nb,),
            in_specs=[
                pl.BlockSpec((nb, cin_pad, hw_pad), lambda g: (g, 0, 0)),
                pl.BlockSpec((cout, k2 * cin_pad), lambda g: (0, 0)),
                pl.BlockSpec((cout, 1), lambda g: (0, 0)),
                pl.BlockSpec((latent, cout), lambda g: (0, 0)),
                pl.BlockSpec((cout, latent), lambda g: (0, 0)),
                pl.BlockSpec((k2, 1, hw_pad), lambda g: (0, 0, 0)),
                pl.BlockSpec((nb * hw_pad, nb), lambda g: (0, 0)),
            ],
            out_specs=pl.BlockSpec((nb, cout, hw_pad), lambda g: (g, 0, 0)),
            scratch_shapes=[
                pltpu.VMEM((k2 * cin_pad, nb * hw_pad), mdt),      # im2col
                pltpu.VMEM((cout, nb * hw_pad), jnp.float32),      # y / accumulator
            ],
        ),
        compiler_params=pltpu.CompilerParams(
            dimension_semantics=("parallel",),
            vmem_limit_bytes=vmem_limit,
        ),
        cost_estimate=cost,
    )(x_flat, w_fused, bc, w1_f, w2_f, masks, pool_m)

    # Output is already channel-major (NCHW) flattened: slice off HW padding, reshape.
    return out[:, :, :hw].reshape(n, cout, h, w)


def _reference(x, conv_w, conv_b, w1, w2):
    # Pure-JAX reference (matches PyTorch SqueezeExciteConv2d.forward).
    y = jax.lax.conv_general_dilated(
        x, conv_w, window_strides=(1, 1), padding="SAME",
        dimension_numbers=("NCHW", "OIHW", "NCHW")) + conv_b[None, :, None, None]
    pooled = y.mean(axis=(2, 3))
    hid = jax.nn.relu(pooled @ w1.T)
    s = jax.nn.sigmoid(hid @ w2.T)
    return y * s[:, :, None, None]


if __name__ == "__main__":
    # Module config: Conv2d(in=4, out=16, k=3, padding=1), latent_channels=0.125 -> 2
    N, Cin, H, W = 2, 4, 16, 16
    Cout, KH, KW = 16, 3, 3
    latent = int(0.125 * Cout)

    key = jax.random.PRNGKey(0)
    kx, kconv, kb, k1, k2 = jax.random.split(key, 5)
    x = jax.random.normal(kx, (N, Cin, H, W), dtype=jnp.float32)
    conv_w = jax.random.normal(kconv, (Cout, Cin, KH, KW), dtype=jnp.float32) * 0.1
    conv_b = jax.random.normal(kb, (Cout,), dtype=jnp.float32) * 0.1
    w1 = jax.random.normal(k1, (latent, Cout), dtype=jnp.float32) * 0.1   # Linear(Cout -> latent)
    w2 = jax.random.normal(k2, (Cout, latent), dtype=jnp.float32) * 0.1   # Linear(latent -> Cout)

    ref = _reference(x, conv_w, conv_b, w1, w2)

    # f32 MXU-operand path.
    out = squeeze_excite_conv2d(x, conv_w, conv_b, w1, w2)
    out = jax.block_until_ready(out)
    assert out.shape == (N, Cout, H, W)
    assert jnp.allclose(out, ref, rtol=1e-3, atol=1e-3)

    # bf16 MXU-operand path (v6e/v7x fast path; f32 accumulation), looser tolerance.
    out_bf16 = squeeze_excite_conv2d(x, conv_w, conv_b, w1, w2, matmul_dtype=jnp.bfloat16)
    out_bf16 = jax.block_until_ready(out_bf16)
    assert jnp.allclose(out_bf16, ref, rtol=2e-2, atol=2e-2)

    # Non-lane-aligned spatial size (HW = 196 -> padded to 256 inside the wrapper).
    x14 = jax.random.normal(kx, (N, Cin, 14, 14), dtype=jnp.float32)
    ref14 = _reference(x14, conv_w, conv_b, w1, w2)
    out14 = jax.block_until_ready(squeeze_excite_conv2d(x14, conv_w, conv_b, w1, w2))
    assert out14.shape == (N, Cout, 14, 14)
    assert jnp.allclose(out14, ref14, rtol=1e-3, atol=1e-3)

    print("KERNEL_OK")
</pallas_src>

<mosaic_0001>
module attributes {stable_mosaic.version = 11 : i64} {
  func.func @se_conv_kernel(%arg0: i32, %arg1: memref<2x8x256xf32, #tpu.memory_space<vmem>>, %arg2: memref<16x72xf32, #tpu.memory_space<vmem>>, %arg3: memref<16x1xf32, #tpu.memory_space<vmem>>, %arg4: memref<2x16xf32, #tpu.memory_space<vmem>>, %arg5: memref<16x2xf32, #tpu.memory_space<vmem>>, %arg6: memref<9x1x256xf32, #tpu.memory_space<vmem>>, %arg7: memref<512x2xf32, #tpu.memory_space<vmem>>, %arg8: memref<2x16x256xf32, #tpu.memory_space<vmem>>, %arg9: memref<72x512xf32, #tpu.memory_space<vmem>>, %arg10: memref<16x512xf32, #tpu.memory_space<vmem>>) attributes {dimension_semantics = [#tpu.dimension_semantics<parallel>], iteration_bounds = array<i64: 1>, scalar_prefetch = 0 : i64, scratch_operands = 2 : i64, tpu.core_type = #tpu.core_type<tc>, window_params = [{transform_indices = @transform_0, window_bounds = array<i64: 2, 8, 256>}, {pipeline_mode = #tpu.pipeline_mode<synchronous>, transform_indices = @transform_1, window_bounds = array<i64: 16, 72>}, {pipeline_mode = #tpu.pipeline_mode<synchronous>, transform_indices = @transform_2, window_bounds = array<i64: 16, 1>}, {pipeline_mode = #tpu.pipeline_mode<synchronous>, transform_indices = @transform_3, window_bounds = array<i64: 2, 16>}, {pipeline_mode = #tpu.pipeline_mode<synchronous>, transform_indices = @transform_4, window_bounds = array<i64: 16, 2>}, {pipeline_mode = #tpu.pipeline_mode<synchronous>, transform_indices = @transform_5, window_bounds = array<i64: 9, 1, 256>}, {pipeline_mode = #tpu.pipeline_mode<synchronous>, transform_indices = @transform_6, window_bounds = array<i64: 512, 2>}, {transform_indices = @transform_7, window_bounds = array<i64: 2, 16, 256>}]} {
    %c0 = arith.constant 0 : index
    %c0_0 = arith.constant 0 : index
    %c0_1 = arith.constant 0 : index
    %0 = vector.load %arg1[%c0, %c0_0, %c0_1] : memref<2x8x256xf32, #tpu.memory_space<vmem>>, vector<1x8x256xf32>
    %1 = vector.shape_cast %0 : vector<1x8x256xf32> to vector<8x256xf32>
    %c17_i32 = arith.constant 17 : i32
    %2 = tpu.dynamic_rotate %1 by %c17_i32 dim 1 : vector<8x256xf32>, i32 -> vector<8x256xf32>
    %c0_2 = arith.constant 0 : index
    %c0_3 = arith.constant 0 : index
    %c0_4 = arith.constant 0 : index
    %3 = vector.load %arg6[%c0_2, %c0_3, %c0_4] : memref<9x1x256xf32, #tpu.memory_space<vmem>>, vector<1x1x256xf32>
    %4 = vector.shape_cast %3 : vector<1x1x256xf32> to vector<1x256xf32>
    %5 = vector.broadcast %4 : vector<1x256xf32> to vector<8x256xf32>
    %6 = arith.mulf %2, %5 : vector<8x256xf32>
    %c0_5 = arith.constant 0 : index
    %c0_6 = arith.constant 0 : index
    %7 = vector.load %arg9[%c0_5, %c0_6] : memref<72x512xf32, #tpu.memory_space<vmem>>, vector<8x256xf32>
    tpu.vector_store %arg9[%c0_5, %c0_6], %6 {strides = array<i32>} : memref<72x512xf32, #tpu.memory_space<vmem>>, vector<8x256xf32>,
    %c16_i32 = arith.constant 16 : i32
    %8 = tpu.dynamic_rotate %1 by %c16_i32 dim 1 : vector<8x256xf32>, i32 -> vector<8x256xf32>
    %c1 = arith.constant 1 : index
    %c0_7 = arith.constant 0 : index
    %c0_8 = arith.constant 0 : index
    %9 = vector.load %arg6[%c1, %c0_7, %c0_8] : memref<9x1x256xf32, #tpu.memory_space<vmem>>, vector<1x1x256xf32>
    %10 = vector.shape_cast %9 : vector<1x1x256xf32> to vector<1x256xf32>
    %11 = vector.broadcast %10 : vector<1x256xf32> to vector<8x256xf32>
    %12 = arith.mulf %8, %11 : vector<8x256xf32>
    %c8 = arith.constant 8 : index
    %c0_9 = arith.constant 0 : index
    %13 = vector.load %arg9[%c8, %c0_9] : memref<72x512xf32, #tpu.memory_space<vmem>>, vector<8x256xf32>
    tpu.vector_store %arg9[%c8, %c0_9], %12 {strides = array<i32>} : memref<72x512xf32, #tpu.memory_space<vmem>>, vector<8x256xf32>,
    %c15_i32 = arith.constant 15 : i32
    %14 = tpu.dynamic_rotate %1 by %c15_i32 dim 1 : vector<8x256xf32>, i32 -> vector<8x256xf32>
    %c2 = arith.constant 2 : index
    %c0_10 = arith.constant 0 : index
    %c0_11 = arith.constant 0 : index
    %15 = vector.load %arg6[%c2, %c0_10, %c0_11] : memref<9x1x256xf32, #tpu.memory_space<vmem>>, vector<1x1x256xf32>
    %16 = vector.shape_cast %15 : vector<1x1x256xf32> to vector<1x256xf32>
    %17 = vector.broadcast %16 : vector<1x256xf32> to vector<8x256xf32>
    %18 = arith.mulf %14, %17 : vector<8x256xf32>
    %c16 = arith.constant 16 : index
    %c0_12 = arith.constant 0 : index
    %19 = vector.load %arg9[%c16, %c0_12] : memref<72x512xf32, #tpu.memory_space<vmem>>, vector<8x256xf32>
    tpu.vector_store %arg9[%c16, %c0_12], %18 {strides = array<i32>} : memref<72x512xf32, #tpu.memory_space<vmem>>, vector<8x256xf32>,
    %c1_i32 = arith.constant 1 : i32
    %20 = tpu.dynamic_rotate %1 by %c1_i32 dim 1 : vector<8x256xf32>, i32 -> vector<8x256xf32>
    %c3 = arith.constant 3 : index
    %c0_13 = arith.constant 0 : index
    %c0_14 = arith.constant 0 : index
    %21 = vector.load %arg6[%c3, %c0_13, %c0_14] : memref<9x1x256xf32, #tpu.memory_space<vmem>>, vector<1x1x256xf32>
    %22 = vector.shape_cast %21 : vector<1x1x256xf32> to vector<1x256xf32>
    %23 = vector.broadcast %22 : vector<1x256xf32> to vector<8x256xf32>
    %24 = arith.mulf %20, %23 : vector<8x256xf32>
    %c24 = arith.constant 24 : index
    %c0_15 = arith.constant 0 : index
    %25 = vector.load %arg9[%c24, %c0_15] : memref<72x512xf32, #tpu.memory_space<vmem>>, vector<8x256xf32>
    tpu.vector_store %arg9[%c24, %c0_15], %24 {strides = array<i32>} : memref<72x512xf32, #tpu.memory_space<vmem>>, vector<8x256xf32>,
    %c32 = arith.constant 32 : index
    %c0_16 = arith.constant 0 : index
    %26 = vector.load %arg9[%c32, %c0_16] : memref<72x512xf32, #tpu.memory_space<vmem>>, vector<8x256xf32>
    tpu.vector_store %arg9[%c32, %c0_16], %1 {strides = array<i32>} : memref<72x512xf32, #tpu.memory_space<vmem>>, vector<8x256xf32>,
    %c255_i32 = arith.constant 255 : i32
    %27 = tpu.dynamic_rotate %1 by %c255_i32 dim 1 : vector<8x256xf32>, i32 -> vector<8x256xf32>
    %c5 = arith.constant 5 : index
    %c0_17 = arith.constant 0 : index
    %c0_18 = arith.constant 0 : index
    %28 = vector.load %arg6[%c5, %c0_17, %c0_18] : memref<9x1x256xf32, #tpu.memory_space<vmem>>, vector<1x1x256xf32>
    %29 = vector.shape_cast %28 : vector<1x1x256xf32> to vector<1x256xf32>
    %30 = vector.broadcast %29 : vector<1x256xf32> to vector<8x256xf32>
    %31 = arith.mulf %27, %30 : vector<8x256xf32>
    %c40 = arith.constant 40 : index
    %c0_19 = arith.constant 0 : index
    %32 = vector.load %arg9[%c40, %c0_19] : memref<72x512xf32, #tpu.memory_space<vmem>>, vector<8x256xf32>
    tpu.vector_store %arg9[%c40, %c0_19], %31 {strides = array<i32>} : memref<72x512xf32, #tpu.memory_space<vmem>>, vector<8x256xf32>,
    %c241_i32 = arith.constant 241 : i32
    %33 = tpu.dynamic_rotate %1 by %c241_i32 dim 1 : vector<8x256xf32>, i32 -> vector<8x256xf32>
    %c6 = arith.constant 6 : index
    %c0_20 = arith.constant 0 : index
    %c0_21 = arith.constant 0 : index
    %34 = vector.load %arg6[%c6, %c0_20, %c0_21] : memref<9x1x256xf32, #tpu.memory_space<vmem>>, vector<1x1x256xf32>
    %35 = vector.shape_cast %34 : vector<1x1x256xf32> to vector<1x256xf32>
    %36 = vector.broadcast %35 : vector<1x256xf32> to vector<8x256xf32>
    %37 = arith.mulf %33, %36 : vector<8x256xf32>
    %c48 = arith.constant 48 : index
    %c0_22 = arith.constant 0 : index
    %38 = vector.load %arg9[%c48, %c0_22] : memref<72x512xf32, #tpu.memory_space<vmem>>, vector<8x256xf32>
    tpu.vector_store %arg9[%c48, %c0_22], %37 {strides = array<i32>} : memref<72x512xf32, #tpu.memory_space<vmem>>, vector<8x256xf32>,
    %c240_i32 = arith.constant 240 : i32
    %39 = tpu.dynamic_rotate %1 by %c240_i32 dim 1 : vector<8x256xf32>, i32 -> vector<8x256xf32>
    %c7 = arith.constant 7 : index
    %c0_23 = arith.constant 0 : index
    %c0_24 = arith.constant 0 : index
    %40 = vector.load %arg6[%c7, %c0_23, %c0_24] : memref<9x1x256xf32, #tpu.memory_space<vmem>>, vector<1x1x256xf32>
    %41 = vector.shape_cast %40 : vector<1x1x256xf32> to vector<1x256xf32>
    %42 = vector.broadcast %41 : vector<1x256xf32> to vector<8x256xf32>
    %43 = arith.mulf %39, %42 : vector<8x256xf32>
    %c56 = arith.constant 56 : index
    %c0_25 = arith.constant 0 : index
    %44 = vector.load %arg9[%c56, %c0_25] : memref<72x512xf32, #tpu.memory_space<vmem>>, vector<8x256xf32>
    tpu.vector_store %arg9[%c56, %c0_25], %43 {strides = array<i32>} : memref<72x512xf32, #tpu.memory_space<vmem>>, vector<8x256xf32>,
    %c239_i32 = arith.constant 239 : i32
    %45 = tpu.dynamic_rotate %1 by %c239_i32 dim 1 : vector<8x256xf32>, i32 -> vector<8x256xf32>
    %c8_26 = arith.constant 8 : index
    %c0_27 = arith.constant 0 : index
    %c0_28 = arith.constant 0 : index
    %46 = vector.load %arg6[%c8_26, %c0_27, %c0_28] : memref<9x1x256xf32, #tpu.memory_space<vmem>>, vector<1x1x256xf32>
    %47 = vector.shape_cast %46 : vector<1x1x256xf32> to vector<1x256xf32>
    %48 = vector.broadcast %47 : vector<1x256xf32> to vector<8x256xf32>
    %49 = arith.mulf %45, %48 : vector<8x256xf32>
    %c64 = arith.constant 64 : index
    %c0_29 = arith.constant 0 : index
    %50 = vector.load %arg9[%c64, %c0_29] : memref<72x512xf32, #tpu.memory_space<vmem>>, vector<8x256xf32>
    tpu.vector_store %arg9[%c64, %c0_29], %49 {strides = array<i32>} : memref<72x512xf32, #tpu.memory_space<vmem>>, vector<8x256xf32>,
    %c1_30 = arith.constant 1 : index
    %c0_31 = arith.constant 0 : index
    %c0_32 = arith.constant 0 : index
    %51 = vector.load %arg1[%c1_30, %c0_31, %c0_32] : memref<2x8x256xf32, #tpu.memory_space<vmem>>, vector<1x8x256xf32>
    %52 = vector.shape_cast %51 : vector<1x8x256xf32> to vector<8x256xf32>
    %c17_i32_33 = arith.constant 17 : i32
    %53 = tpu.dynamic_rotate %52 by %c17_i32_33 dim 1 : vector<8x256xf32>, i32 -> vector<8x256xf32>
    %c0_34 = arith.constant 0 : index
    %c0_35 = arith.constant 0 : index
    %c0_36 = arith.constant 0 : index
    %54 = vector.load %arg6[%c0_34, %c0_35, %c0_36] : memref<9x1x256xf32, #tpu.memory_space<vmem>>, vector<1x1x256xf32>
    %55 = vector.shape_cast %54 : vector<1x1x256xf32> to vector<1x256xf32>
    %56 = vector.broadcast %55 : vector<1x256xf32> to vector<8x256xf32>
    %57 = arith.mulf %53, %56 : vector<8x256xf32>
    %c0_37 = arith.constant 0 : index
    %c256 = arith.constant 256 : index
    %58 = vector.load %arg9[%c0_37, %c256] : memref<72x512xf32, #tpu.memory_space<vmem>>, vector<8x256xf32>
    tpu.vector_store %arg9[%c0_37, %c256], %57 {strides = array<i32>} : memref<72x512xf32, #tpu.memory_space<vmem>>, vector<8x256xf32>,
    %c16_i32_38 = arith.constant 16 : i32
    %59 = tpu.dynamic_rotate %52 by %c16_i32_38 dim 1 : vector<8x256xf32>, i32 -> vector<8x256xf32>
    %c1_39 = arith.constant 1 : index
    %c0_40 = arith.constant 0 : index
    %c0_41 = arith.constant 0 : index
    %60 = vector.load %arg6[%c1_39, %c0_40, %c0_41] : memref<9x1x256xf32, #tpu.memory_space<vmem>>, vector<1x1x256xf32>
    %61 = vector.shape_cast %60 : vector<1x1x256xf32> to vector<1x256xf32>
    %62 = vector.broadcast %61 : vector<1x256xf32> to vector<8x256xf32>
    %63 = arith.mulf %59, %62 : vector<8x256xf32>
    %c8_42 = arith.constant 8 : index
    %c256_43 = arith.constant 256 : index
    %64 = vector.load %arg9[%c8_42, %c256_43] : memref<72x512xf32, #tpu.memory_space<vmem>>, vector<8x256xf32>
    tpu.vector_store %arg9[%c8_42, %c256_43], %63 {strides = array<i32>} : memref<72x512xf32, #tpu.memory_space<vmem>>, vector<8x256xf32>,
    %c15_i32_44 = arith.constant 15 : i32
    %65 = tpu.dynamic_rotate %52 by %c15_i32_44 dim 1 : vector<8x256xf32>, i32 -> vector<8x256xf32>
    %c2_45 = arith.constant 2 : index
    %c0_46 = arith.constant 0 : index
    %c0_47 = arith.constant 0 : index
    %66 = vector.load %arg6[%c2_45, %c0_46, %c0_47] : memref<9x1x256xf32, #tpu.memory_space<vmem>>, vector<1x1x256xf32>
    %67 = vector.shape_cast %66 : vector<1x1x256xf32> to vector<1x256xf32>
    %68 = vector.broadcast %67 : vector<1x256xf32> to vector<8x256xf32>
    %69 = arith.mulf %65, %68 : vector<8x256xf32>
    %c16_48 = arith.constant 16 : index
    %c256_49 = arith.constant 256 : index
    %70 = vector.load %arg9[%c16_48, %c256_49] : memref<72x512xf32, #tpu.memory_space<vmem>>, vector<8x256xf32>
    tpu.vector_store %arg9[%c16_48, %c256_49], %69 {strides = array<i32>} : memref<72x512xf32, #tpu.memory_space<vmem>>, vector<8x256xf32>,
    %c1_i32_50 = arith.constant 1 : i32
    %71 = tpu.dynamic_rotate %52 by %c1_i32_50 dim 1 : vector<8x256xf32>, i32 -> vector<8x256xf32>
    %c3_51 = arith.constant 3 : index
    %c0_52 = arith.constant 0 : index
    %c0_53 = arith.constant 0 : index
    %72 = vector.load %arg6[%c3_51, %c0_52, %c0_53] : memref<9x1x256xf32, #tpu.memory_space<vmem>>, vector<1x1x256xf32>
    %73 = vector.shape_cast %72 : vector<1x1x256xf32> to vector<1x256xf32>
    %74 = vector.broadcast %73 : vector<1x256xf32> to vector<8x256xf32>
    %75 = arith.mulf %71, %74 : vector<8x256xf32>
    %c24_54 = arith.constant 24 : index
    %c256_55 = arith.constant 256 : index
    %76 = vector.load %arg9[%c24_54, %c256_55] : memref<72x512xf32, #tpu.memory_space<vmem>>, vector<8x256xf32>
    tpu.vector_store %arg9[%c24_54, %c256_55], %75 {strides = array<i32>} : memref<72x512xf32, #tpu.memory_space<vmem>>, vector<8x256xf32>,
    %c32_56 = arith.constant 32 : index
    %c256_57 = arith.constant 256 : index
    %77 = vector.load %arg9[%c32_56, %c256_57] : memref<72x512xf32, #tpu.memory_space<vmem>>, vector<8x256xf32>
    tpu.vector_store %arg9[%c32_56, %c256_57], %52 {strides = array<i32>} : memref<72x512xf32, #tpu.memory_space<vmem>>, vector<8x256xf32>,
    %c255_i32_58 = arith.constant 255 : i32
    %78 = tpu.dynamic_rotate %52 by %c255_i32_58 dim 1 : vector<8x256xf32>, i32 -> vector<8x256xf32>
    %c5_59 = arith.constant 5 : index
    %c0_60 = arith.constant 0 : index
    %c0_61 = arith.constant 0 : index
    %79 = vector.load %arg6[%c5_59, %c0_60, %c0_61] : memref<9x1x256xf32, #tpu.memory_space<vmem>>, vector<1x1x256xf32>
    %80 = vector.shape_cast %79 : vector<1x1x256xf32> to vector<1x256xf32>
    %81 = vector.broadcast %80 : vector<1x256xf32> to vector<8x256xf32>
    %82 = arith.mulf %78, %81 : vector<8x256xf32>
    %c40_62 = arith.constant 40 : index
    %c256_63 = arith.constant 256 : index
    %83 = vector.load %arg9[%c40_62, %c256_63] : memref<72x512xf32, #tpu.memory_space<vmem>>, vector<8x256xf32>
    tpu.vector_store %arg9[%c40_62, %c256_63], %82 {strides = array<i32>} : memref<72x512xf32, #tpu.memory_space<vmem>>, vector<8x256xf32>,
    %c241_i32_64 = arith.constant 241 : i32
    %84 = tpu.dynamic_rotate %52 by %c241_i32_64 dim 1 : vector<8x256xf32>, i32 -> vector<8x256xf32>
    %c6_65 = arith.constant 6 : index
    %c0_66 = arith.constant 0 : index
    %c0_67 = arith.constant 0 : index
    %85 = vector.load %arg6[%c6_65, %c0_66, %c0_67] : memref<9x1x256xf32, #tpu.memory_space<vmem>>, vector<1x1x256xf32>
    %86 = vector.shape_cast %85 : vector<1x1x256xf32> to vector<1x256xf32>
    %87 = vector.broadcast %86 : vector<1x256xf32> to vector<8x256xf32>
    %88 = arith.mulf %84, %87 : vector<8x256xf32>
    %c48_68 = arith.constant 48 : index
    %c256_69 = arith.constant 256 : index
    %89 = vector.load %arg9[%c48_68, %c256_69] : memref<72x512xf32, #tpu.memory_space<vmem>>, vector<8x256xf32>
    tpu.vector_store %arg9[%c48_68, %c256_69], %88 {strides = array<i32>} : memref<72x512xf32, #tpu.memory_space<vmem>>, vector<8x256xf32>,
    %c240_i32_70 = arith.constant 240 : i32
    %90 = tpu.dynamic_rotate %52 by %c240_i32_70 dim 1 : vector<8x256xf32>, i32 -> vector<8x256xf32>
    %c7_71 = arith.constant 7 : index
    %c0_72 = arith.constant 0 : index
    %c0_73 = arith.constant 0 : index
    %91 = vector.load %arg6[%c7_71, %c0_72, %c0_73] : memref<9x1x256xf32, #tpu.memory_space<vmem>>, vector<1x1x256xf32>
    %92 = vector.shape_cast %91 : vector<1x1x256xf32> to vector<1x256xf32>
    %93 = vector.broadcast %92 : vector<1x256xf32> to vector<8x256xf32>
    %94 = arith.mulf %90, %93 : vector<8x256xf32>
    %c56_74 = arith.constant 56 : index
    %c256_75 = arith.constant 256 : index
    %95 = vector.load %arg9[%c56_74, %c256_75] : memref<72x512xf32, #tpu.memory_space<vmem>>, vector<8x256xf32>
    tpu.vector_store %arg9[%c56_74, %c256_75], %94 {strides = array<i32>} : memref<72x512xf32, #tpu.memory_space<vmem>>, vector<8x256xf32>,
    %c239_i32_76 = arith.constant 239 : i32
    %96 = tpu.dynamic_rotate %52 by %c239_i32_76 dim 1 : vector<8x256xf32>, i32 -> vector<8x256xf32>
    %c8_77 = arith.constant 8 : index
    %c0_78 = arith.constant 0 : index
    %c0_79 = arith.constant 0 : index
    %97 = vector.load %arg6[%c8_77, %c0_78, %c0_79] : memref<9x1x256xf32, #tpu.memory_space<vmem>>, vector<1x1x256xf32>
    %98 = vector.shape_cast %97 : vector<1x1x256xf32> to vector<1x256xf32>
    %99 = vector.broadcast %98 : vector<1x256xf32> to vector<8x256xf32>
    %100 = arith.mulf %96, %99 : vector<8x256xf32>
    %c64_80 = arith.constant 64 : index
    %c256_81 = arith.constant 256 : index
    %101 = vector.load %arg9[%c64_80, %c256_81] : memref<72x512xf32, #tpu.memory_space<vmem>>, vector<8x256xf32>
    tpu.vector_store %arg9[%c64_80, %c256_81], %100 {strides = array<i32>} : memref<72x512xf32, #tpu.memory_space<vmem>>, vector<8x256xf32>,
    %c0_82 = arith.constant 0 : index
    %c0_83 = arith.constant 0 : index
    %102 = vector.load %arg2[%c0_82, %c0_83] : memref<16x72xf32, #tpu.memory_space<vmem>>, vector<16x72xf32>
    %c0_84 = arith.constant 0 : index
    %c0_85 = arith.constant 0 : index
    %103 = vector.load %arg9[%c0_84, %c0_85] : memref<72x512xf32, #tpu.memory_space<vmem>>, vector<72x512xf32>
    %cst = arith.constant dense<0.000000e+00> : vector<16x512xf32>
    %104 = tpu.matmul %102, %103, %cst {dimension_numbers = #tpu.dot_dimension_numbers<[1], [0], [0], [1], [0, 0, 1, 1], [], []>} : vector<16x72xf32>, vector<72x512xf32>, vector<16x512xf32> -> vector<16x512xf32>
    %c0_86 = arith.constant 0 : index
    %c0_87 = arith.constant 0 : index
    %105 = vector.load %arg3[%c0_86, %c0_87] : memref<16x1xf32, #tpu.memory_space<vmem>>, vector<16x1xf32>
    %106 = vector.broadcast %105 : vector<16x1xf32> to vector<16x512xf32>
    %107 = arith.addf %104, %106 : vector<16x512xf32>
    %c0_88 = arith.constant 0 : index
    %c0_89 = arith.constant 0 : index
    %108 = vector.load %arg10[%c0_88, %c0_89] : memref<16x512xf32, #tpu.memory_space<vmem>>, vector<16x512xf32>
    tpu.vector_store %arg10[%c0_88, %c0_89], %107 {strides = array<i32>} : memref<16x512xf32, #tpu.memory_space<vmem>>, vector<16x512xf32>,
    %c0_90 = arith.constant 0 : index
    %c0_91 = arith.constant 0 : index
    %109 = vector.load %arg10[%c0_90, %c0_91] : memref<16x512xf32, #tpu.memory_space<vmem>>, vector<16x512xf32>
    %c0_92 = arith.constant 0 : index
    %c0_93 = arith.constant 0 : index
    %110 = vector.load %arg7[%c0_92, %c0_93] : memref<512x2xf32, #tpu.memory_space<vmem>>, vector<512x2xf32>
    %cst_94 = arith.constant dense<0.000000e+00> : vector<16x2xf32>
    %111 = tpu.matmul %109, %110, %cst_94 {dimension_numbers = #tpu.dot_dimension_numbers<[1], [0], [0], [1], [0, 0, 1, 1], [], []>} : vector<16x512xf32>, vector<512x2xf32>, vector<16x2xf32> -> vector<16x2xf32>
    %c0_95 = arith.constant 0 : index
    %c0_96 = arith.constant 0 : index
    %112 = vector.load %arg4[%c0_95, %c0_96] : memref<2x16xf32, #tpu.memory_space<vmem>>, vector<2x16xf32>
    %cst_97 = arith.constant dense<0.000000e+00> : vector<2x2xf32>
    %113 = tpu.matmul %112, %111, %cst_97 {dimension_numbers = #tpu.dot_dimension_numbers<[1], [0], [0], [1], [0, 0, 1, 1], [], []>} : vector<2x16xf32>, vector<16x2xf32>, vector<2x2xf32> -> vector<2x2xf32>
    %cst_98 = arith.constant 0.000000e+00 : f32
    %114 = vector.broadcast %cst_98 : f32 to vector<2x2xf32>
    %115 = arith.maximumf %113, %114 : vector<2x2xf32>
    %c0_99 = arith.constant 0 : index
    %c0_100 = arith.constant 0 : index
    %116 = vector.load %arg5[%c0_99, %c0_100] : memref<16x2xf32, #tpu.memory_space<vmem>>, vector<16x2xf32>
    %cst_101 = arith.constant dense<0.000000e+00> : vector<16x2xf32>
    %117 = tpu.matmul %116, %115, %cst_101 {dimension_numbers = #tpu.dot_dimension_numbers<[1], [0], [0], [1], [0, 0, 1, 1], [], []>} : vector<16x2xf32>, vector<2x2xf32>, vector<16x2xf32> -> vector<16x2xf32>
    %118 = arith.negf %117 : vector<16x2xf32>
    %119 = math.exp %118 : vector<16x2xf32>
    %cst_102 = arith.constant 1.000000e+00 : f32
    %120 = vector.broadcast %cst_102 : f32 to vector<16x2xf32>
    %121 = arith.addf %120, %119 : vector<16x2xf32>
    %122 = arith.divf %120, %121 : vector<16x2xf32>
    %c0_103 = arith.constant 0 : index
    %c0_104 = arith.constant 0 : index
    %123 = vector.load %arg10[%c0_103, %c0_104] : memref<16x512xf32, #tpu.memory_space<vmem>>, vector<16x256xf32>
    %124 = vector.extract_strided_slice %122 {offsets = [0, 0], sizes = [16, 1], strides = [1, 1]} : vector<16x2xf32> to vector<16x1xf32>
    %125 = vector.broadcast %124 : vector<16x1xf32> to vector<16x256xf32>
    %126 = arith.mulf %123, %125 : vector<16x256xf32>
    %c0_105 = arith.constant 0 : index
    %c0_106 = arith.constant 0 : index
    %c0_107 = arith.constant 0 : index
    %127 = vector.load %arg8[%c0_105, %c0_106, %c0_107] : memref<2x16x256xf32, #tpu.memory_space<vmem>>, vector<1x16x256xf32>
    %128 = vector.shape_cast %127 : vector<1x16x256xf32> to vector<16x256xf32>
    %129 = vector.shape_cast %126 : vector<16x256xf32> to vector<1x16x256xf32>
    tpu.vector_store %arg8[%c0_105, %c0_106, %c0_107], %129 {strides = array<i32>} : memref<2x16x256xf32, #tpu.memory_space<vmem>>, vector<1x16x256xf32>,
    %c0_108 = arith.constant 0 : index
    %c256_109 = arith.constant 256 : index
    %130 = vector.load %arg10[%c0_108, %c256_109] : memref<16x512xf32, #tpu.memory_space<vmem>>, vector<16x256xf32>
    %131 = vector.extract_strided_slice %122 {offsets = [0, 1], sizes = [16, 1], strides = [1, 1]} : vector<16x2xf32> to vector<16x1xf32>
    %132 = vector.broadcast %131 : vector<16x1xf32> to vector<16x256xf32>
    %133 = arith.mulf %130, %132 : vector<16x256xf32>
    %c1_110 = arith.constant 1 : index
    %c0_111 = arith.constant 0 : index
    %c0_112 = arith.constant 0 : index
    %134 = vector.load %arg8[%c1_110, %c0_111, %c0_112] : memref<2x16x256xf32, #tpu.memory_space<vmem>>, vector<1x16x256xf32>
    %135 = vector.shape_cast %134 : vector<1x16x256xf32> to vector<16x256xf32>
    %136 = vector.shape_cast %133 : vector<16x256xf32> to vector<1x16x256xf32>
    tpu.vector_store %arg8[%c1_110, %c0_111, %c0_112], %136 {strides = array<i32>} : memref<2x16x256xf32, #tpu.memory_space<vmem>>, vector<1x16x256xf32>,
    return
  }
  func.func @transform_0(%arg0: i32) -> (i32, i32, i32) {
    %c0_i32 = arith.constant 0 : i32
    %c0_i32_0 = arith.constant 0 : i32
    %c0_i32_1 = arith.constant 0 : i32
    return %arg0, %c0_i32, %c0_i32_0 : i32, i32, i32
  }
  func.func @transform_1(%arg0: i32) -> (i32, i32) {
    %c0_i32 = arith.constant 0 : i32
    %c0_i32_0 = arith.constant 0 : i32
    %c0_i32_1 = arith.constant 0 : i32
    return %c0_i32, %c0_i32_0 : i32, i32
  }
  func.func @transform_2(%arg0: i32) -> (i32, i32) {
    %c0_i32 = arith.constant 0 : i32
    %c0_i32_0 = arith.constant 0 : i32
    %c0_i32_1 = arith.constant 0 : i32
    return %c0_i32, %c0_i32_0 : i32, i32
  }
  func.func @transform_3(%arg0: i32) -> (i32, i32) {
    %c0_i32 = arith.constant 0 : i32
    %c0_i32_0 = arith.constant 0 : i32
    %c0_i32_1 = arith.constant 0 : i32
    return %c0_i32, %c0_i32_0 : i32, i32
  }
  func.func @transform_4(%arg0: i32) -> (i32, i32) {
    %c0_i32 = arith.constant 0 : i32
    %c0_i32_0 = arith.constant 0 : i32
    %c0_i32_1 = arith.constant 0 : i32
    return %c0_i32, %c0_i32_0 : i32, i32
  }
  func.func @transform_5(%arg0: i32) -> (i32, i32, i32) {
    %c0_i32 = arith.constant 0 : i32
    %c0_i32_0 = arith.constant 0 : i32
    %c0_i32_1 = arith.constant 0 : i32
    %c0_i32_2 = arith.constant 0 : i32
    return %c0_i32, %c0_i32_0, %c0_i32_1 : i32, i32, i32
  }
  func.func @transform_6(%arg0: i32) -> (i32, i32) {
    %c0_i32 = arith.constant 0 : i32
    %c0_i32_0 = arith.constant 0 : i32
    %c0_i32_1 = arith.constant 0 : i32
    return %c0_i32, %c0_i32_0 : i32, i32
  }
  func.func @transform_7(%arg0: i32) -> (i32, i32, i32) {
    %c0_i32 = arith.constant 0 : i32
    %c0_i32_0 = arith.constant 0 : i32
    %c0_i32_1 = arith.constant 0 : i32
    return %arg0, %c0_i32, %c0_i32_0 : i32, i32, i32
  }
}

</mosaic_0001>

<bundles_post_ra>
// kernel: tpu_custom_call.1
= control target key start
LH: loop header
LB: loop body
LE: loop exit
PB: predicated region body
PF: predicated region fallthrough
CT: control target
= control target key end

     0   :  { %s1249_s28 = smov 111   ;;  %s1773_s0 = inlined_call_operand.vmem [shape: f32[2,8,256], index: 0, kind: input, shape index: {}]   ;;  %s1774_s1 = inlined_call_operand.vmem [shape: f32[16,72], index: 1, kind: input, shape index: {}]   ;;  %s1775_s2 = inlined_call_operand.vmem [shape: f32[16,1], index: 2, kind: input, shape index: {}]   ;;  %s1776_s3 = inlined_call_operand.vmem [shape: f32[2,16], index: 3, kind: input, shape index: {}]   ;;  %s1777_s4 = inlined_call_operand.vmem [shape: f32[16,2], index: 4, kind: input, shape index: {}]   ;;  %s1778_s5 = inlined_call_operand.vmem [shape: f32[9,1,256], index: 5, kind: input, shape index: {}]   ;;  %s1779_s6 = inlined_call_operand.vmem [shape: f32[512,2], index: 6, kind: input, shape index: {}]   ;;  %s1780_s7 = inlined_call_operand.hbm [shape: f32[2,16,256], index: 7, kind: output, shape index: {}]  }
   0x1   :  { %v1306_v0 = vld [vmem:[%s1773_s0 + $0x10] sm:$0xff]  ;;  %v1311_v1 = vld [vmem:[%s1773_s0] sm:$0xff]  ;;  %v1318_v2 = vld [vmem:[%s1773_s0 + $0x18] sm:$0xff] }
   0x2   :  { %383 = vrot.lane.b32.xlu1 %v1306_v0, %s1249_s28  ;;  %200 = vrot.lane.b32.xlu0 %v1311_v1, %s1249_s28  ;;  %v1323_v3 = vld [vmem:[%s1773_s0 + $0x8] sm:$0xff] }
   0x6   :  { %385 = vrot.lane.b32.xlu1 %v1318_v2, %s1249_s28  ;;  %202 = vrot.lane.b32.xlu0 %v1323_v3, %s1249_s28 }
   0x7   :  { %12 = vsyncpa [#allocation5], 0  ;;  %s1250_s10 = smov 112   ;;  %s1251_s11 = smov 113   ;;  %v1255_v4 = vmov 0.0   ;;  %v1258_v5 = vmov 0   ;;  %v33_v8 = vlaneseq }
   0x8   :  { %s1252_s0 = smov 127   ;;  %s1253_s12 = smov 1   ;;  %526 = vmatprep.mubr.f32.mxu0 %v1255_v4  ;;  %603 = vmatprep.mubr.f32.mxu1 %v1255_v4  ;;  %v443_v6 = vld [vmem:[%s1775_s2] sm:$0xff]  ;;  %v444_v7 = vld [vmem:[%s1775_s2 + $0x8] sm:$0xff]  ;;  %v1096_v13 = vld [vmem:[%s1778_s5 + $0x10] sm:$0x3] }
   0x9   :  { %s1254_s13 = smov 15   ;;  %s1256_s14 = smov 16   ;;  %1215 = vset.pattern.permute.xlu0 %v1258_v5  ;;  %1216 = vset.pattern.permute.xlu1 %v1258_v5  ;;  %v41_v9 = vshrl.u32 %v33_v8, 7  ;;  %v1367_v10 = vand.u32 127, %v33_v8  ;;  %v1087_v14 = vld [vmem:[%s1778_s5 + $0x10] sm:$0x3] }
   0xa   :  { %178 = vrot.lane.b32.xlu1 %v1323_v3, %s1250_s10  ;;  %176 = vrot.lane.b32.xlu0 %v1311_v1, %s1250_s10  ;;  %s1257_s15 = smov 17   ;;  %v1086_v17 = vld [vmem:[%s1778_s5 + $0xe] sm:$0x3]  ;;  %v1085_v43 = vld [vmem:[%s1778_s5 + $0xc] sm:$0x3]  ;;  %vm455_vm8 = vcmask 588800  }
   0xb   :  { %v1369_v11 = vsub.s32 0, %v41_v9  ;;  %v1371_v12 = vsub.s32 1, %v41_v9  ;;  %vm204_vm0 = vcmp.lt.s32.totalorder %v1367_v10, 111  ;;  %vm180_vm1 = vcmp.lt.s32.totalorder %v1367_v10, 112  ;;  %v1095_v34 = vld [vmem:[%s1778_s5 + $0xe] sm:$0x3] }
   0xc   :  { %vm156_vm2 = vcmp.lt.s32.totalorder %v1367_v10, 113  ;;  %v1094_v52 = vld [vmem:[%s1778_s5 + $0xc] sm:$0x3]  ;;  %v1084_v61 = vld [vmem:[%s1778_s5 + $0xa] sm:$0x3]  ;;  %vm132_vm3 = vcmp.lt.s32.totalorder %v1367_v10, 127 }
   0xd   :  { %v398_v18 = vrot.slane %v1096_v13, %v1371_v12  ;;  %v217_v19 = vrot.slane %v1087_v14, %v1371_v12  ;;  %v213_v20 = vrot.slane %v1087_v14, %v1369_v11  ;;  %v394_v21 = vrot.slane %v1096_v13, %v1369_v11  ;;  %v1093_v14 = vld [vmem:[%s1778_s5 + $0xa] sm:$0x3] }
   0xe   :  { %363 = vrot.lane.b32.xlu1 %v1318_v2, %s1250_s10  ;;  %361 = vrot.lane.b32.xlu0 %v1306_v0, %s1250_s10  ;;  %v189_v24 = vrot.slane %v1086_v17, %v1369_v11  ;;  %v193_v25 = vrot.slane %v1086_v17, %v1371_v12  ;;  %v372_v41 = vrot.slane %v1095_v34, %v1369_v11  ;;  %vm106_vm4 = vcmp.lt.s32.totalorder %v1367_v10, 1 }
   0xf   :  { %v376_v42 = vrot.slane %v1095_v34, %v1371_v12  ;;  %v165_v50 = vrot.slane %v1085_v43, %v1369_v11  ;;  %v169_v51 = vrot.slane %v1085_v43, %v1371_v12  ;;  %v350_v59 = vrot.slane %v1094_v52, %v1369_v11 }
  0x10   :  { %v354_v60 = vrot.slane %v1094_v52, %v1371_v12  ;;  %v141_v9 = vrot.slane %v1084_v61, %v1369_v11  ;;  %v145_v13 = vrot.slane %v1084_v61, %v1371_v12  ;;  %vm82_vm5 = vcmp.lt.s32.totalorder %v1367_v10, 15 }
  0x11   :  { %vm58_vm6 = vcmp.lt.s32.totalorder %v1367_v10, 16  ;;  %vm35_vm7 = vcmp.lt.s32.totalorder %v1367_v10, 17  ;;  %v406_v10 = vld [vmem:[%s1774_s1 + $0x8] sm:$0xff]  ;;  %vm1259_vm9 = vmmov 0   ;;  %vm847_vm10 = vcmask 130048  }
  0x12   :  { %154 = vrot.lane.b32.xlu1 %v1323_v3, %s1251_s11  ;;  %152 = vrot.lane.b32.xlu0 %v1311_v1, %s1251_s11  ;;  %vm924_vm11 = vcmask 15360   ;;  %vm931_vm12 = vcmask 1041408  }
  0x16   :  { %341 = vrot.lane.b32.xlu1 %v1318_v2, %s1251_s11  ;;  %339 = vrot.lane.b32.xlu0 %v1306_v0, %s1251_s11 }
  0x1a   :  { %130 = vrot.lane.b32.xlu1 %v1323_v3, %s1252_s0  ;;  %128 = vrot.lane.b32.xlu0 %v1311_v1, %s1252_s0 }
  0x1e   :  { %319 = vrot.lane.b32.xlu1 %v1318_v2, %s1252_s0  ;;  %317 = vrot.lane.b32.xlu0 %v1306_v0, %s1252_s0 }
  0x22   :  { %104 = vrot.lane.b32.xlu1 %v1323_v3, %s1253_s12  ;;  %102 = vrot.lane.b32.xlu0 %v1311_v1, %s1253_s12 }
  0x26   :  { %295 = vrot.lane.b32.xlu1 %v1318_v2, %s1253_s12  ;;  %293 = vrot.lane.b32.xlu0 %v1306_v0, %s1253_s12 }
  0x2a   :  { %80 = vrot.lane.b32.xlu1 %v1323_v3, %s1254_s13  ;;  %78 = vrot.lane.b32.xlu0 %v1311_v1, %s1254_s13 }
  0x2e   :  { %273 = vrot.lane.b32.xlu1 %v1318_v2, %s1254_s13  ;;  %271 = vrot.lane.b32.xlu0 %v1306_v0, %s1254_s13 }
  0x32   :  { %56 = vrot.lane.b32.xlu1 %v1323_v3, %s1256_s14  ;;  %54 = vrot.lane.b32.xlu0 %v1311_v1, %s1256_s14 }
  0x36   :  { %251 = vrot.lane.b32.xlu1 %v1318_v2, %s1256_s14  ;;  %249 = vrot.lane.b32.xlu0 %v1306_v0, %s1256_s14 }
  0x3a   :  { %31 = vrot.lane.b32.xlu1 %v1323_v3, %s1257_s15  ;;  %29 = vrot.lane.b32.xlu0 %v1311_v1, %s1257_s15 }
  0x3e   :  { %229 = vrot.lane.b32.xlu1 %v1318_v2, %s1257_s15  ;;  %227 = vrot.lane.b32.xlu0 %v1306_v0, %s1257_s15 }
  0x42   :  { %447 = vperm.xlu0 %1215, %v443_v6   ;;  %452 = vperm.xlu1 %1216, %v444_v7  }
  0x74   :  { %v384_v15 = vpop.permute.xlu1 %383  ;;  %v201_v16 = vpop.permute.xlu0 %200 }
  0x78   :  { %v386_v22 = vpop.permute.xlu1 %385  ;;  %v203_v23 = vpop.permute.xlu0 %202 }
  0x79   :  { %v387_v26 = vsel %vm204_vm0, %v384_v15, %v386_v22  ;;  %v205_v27 = vsel %vm204_vm0, %v201_v16, %v203_v23  ;;  %v388_v28 = vsel %vm204_vm0, %v386_v22, %v384_v15  ;;  %v206_v29 = vsel %vm204_vm0, %v203_v23, %v201_v16  ;;  %v1083_v23 = vld [vmem:[%s1778_s5 + $0x6] sm:$0x3] }
  0x7a   :  { %v402_v30 = vmul.f32 %v398_v18, %v388_v28  ;;  %v221_v31 = vmul.f32 %v217_v19, %v206_v29  ;;  %v220_v32 = vmul.f32 %v213_v20, %v205_v27  ;;  %v401_v33 = vmul.f32 %v394_v21, %v387_v26 }
  0x7b   :  { %v328_v21 = vrot.slane %v1093_v14, %v1369_v11  ;;  %v332_v22 = vrot.slane %v1093_v14, %v1371_v12 }
  0x7c   :  { %553 = vmatprep.subr.mxu1 %v402_v30  ;;  %v179_v35 = vpop.permute.xlu1 %178  ;;  %476 = vmatprep.subr.mxu0 %v221_v31  ;;  %v177_v36 = vpop.permute.xlu0 %176  ;;  %v115_v30 = vrot.slane %v1083_v23, %v1369_v11  ;;  %v119_v31 = vrot.slane %v1083_v23, %v1371_v12 }
  0x7d   :  { %v181_v37 = vsel %vm180_vm1, %v177_v36, %v179_v35  ;;  %v182_v38 = vsel %vm180_vm1, %v179_v35, %v177_v36  ;;  %477 = vmatpush1.msra.mxu0 %v220_v32  ;;  %554 = vmatpush1.msra.mxu1 %v401_v33  ;;  %v1092_v32 = vld [vmem:[%s1778_s5 + $0x6] sm:$0x3] }
  0x7e   :  { %v196_v39 = vmul.f32 %v189_v24, %v181_v37  ;;  %v197_v40 = vmul.f32 %v193_v25, %v182_v38 }
  0x80   :  { %v364_v44 = vpop.permute.xlu1 %363  ;;  %478 = vmatprep.subr.mxu0 %v197_v40  ;;  %v362_v45 = vpop.permute.xlu0 %361 }
  0x81   :  { %v365_v46 = vsel %vm180_vm1, %v362_v45, %v364_v44  ;;  %v366_v47 = vsel %vm180_vm1, %v364_v44, %v362_v45  ;;  %479 = vmatpush1.msra.mxu0 %v196_v39  ;;  %v1082_v39 = vld [vmem:[%s1778_s5 + $0x4] sm:$0x3] }
  0x82   :  { %v379_v48 = vmul.f32 %v372_v41, %v365_v46  ;;  %v380_v49 = vmul.f32 %v376_v42, %v366_v47  ;;  %v95_v45 = vrot.slane %v1082_v39, %v1371_v12  ;;  %v1091_v46 = vld [vmem:[%s1778_s5 + $0x4] sm:$0x3] }
  0x84   :  { %v155_v53 = vpop.permute.xlu1 %154  ;;  %555 = vmatprep.subr.mxu1 %v380_v49  ;;  %v153_v54 = vpop.permute.xlu0 %152 }
  0x85   :  { %v157_v55 = vsel %vm156_vm2, %v153_v54, %v155_v53  ;;  %v158_v56 = vsel %vm156_vm2, %v155_v53, %v153_v54  ;;  %556 = vmatpush1.msra.mxu1 %v379_v48  ;;  %v282_v53 = vrot.slane %v1091_v46, %v1369_v11  ;;  %v286_v54 = vrot.slane %v1091_v46, %v1371_v12  ;;  %v644_v46 = vld [vmem:[%s1779_s6 + $0x60] sm:$0xff] }
  0x86   :  { %v172_v57 = vmul.f32 %v165_v50, %v157_v55  ;;  %v173_v58 = vmul.f32 %v169_v51, %v158_v56  ;;  %v1081_v55 = vld [vmem:[%s1778_s5 + $0x2] sm:$0x3] }
  0x88   :  { %v342_v62 = vpop.permute.xlu1 %341  ;;  %480 = vmatprep.subr.mxu0 %v173_v58  ;;  %v340_v63 = vpop.permute.xlu0 %339 }
  0x89   :  { %v343_v5 = vsel %vm156_vm2, %v340_v63, %v342_v62  ;;  %v344_v6 = vsel %vm156_vm2, %v342_v62, %v340_v63  ;;  %481 = vmatpush1.msra.mxu0 %v172_v57  ;;  %v67_v62 = vrot.slane %v1081_v55, %v1369_v11  ;;  %v71_v63 = vrot.slane %v1081_v55, %v1371_v12  ;;  %v676_v55 = vld [vmem:[%s1779_s6 + $0x160] sm:$0xff] }
  0x8a   :  { %v357_v7 = vmul.f32 %v350_v59, %v343_v5  ;;  %v358_v8 = vmul.f32 %v354_v60, %v344_v6  ;;  %v1090_v5 = vld [vmem:[%s1778_s5 + $0x2] sm:$0x3] }
  0x8c   :  { %v131_v15 = vpop.permute.xlu1 %130  ;;  %557 = vmatprep.subr.mxu1 %v358_v8  ;;  %v129_v16 = vpop.permute.xlu0 %128 }
  0x8d   :  { %v133_v17 = vsel %vm132_vm3, %v129_v16, %v131_v15  ;;  %v134_v18 = vsel %vm132_vm3, %v131_v15, %v129_v16  ;;  %558 = vmatpush1.msra.mxu1 %v357_v7  ;;  %v260_v15 = vrot.slane %v1090_v5, %v1369_v11  ;;  %v264_v16 = vrot.slane %v1090_v5, %v1371_v12  ;;  %v655_v5 = vld [vmem:[%s1779_s6 + $0xb8] sm:$0xff] }
  0x8e   :  { %v148_v19 = vmul.f32 %v141_v9, %v133_v17  ;;  %v149_v20 = vmul.f32 %v145_v13, %v134_v18  ;;  %v38_v17 = vld [vmem:[%s1778_s5] sm:$0x3] }
  0x90   :  { %v320_v24 = vpop.permute.xlu1 %319  ;;  %482 = vmatprep.subr.mxu0 %v149_v20  ;;  %v318_v25 = vpop.permute.xlu0 %317 }
  0x91   :  { %v321_v26 = vsel %vm132_vm3, %v318_v25, %v320_v24  ;;  %v322_v27 = vsel %vm132_vm3, %v320_v24, %v318_v25  ;;  %483 = vmatpush1.msra.mxu0 %v148_v19  ;;  %v43_v24 = vrot.slane %v38_v17, %v1369_v11  ;;  %v47_v25 = vrot.slane %v38_v17, %v1371_v12  ;;  %v687_v17 = vld [vmem:[%s1779_s6 + $0x1b8] sm:$0xff] }
  0x92   :  { %v335_v28 = vmul.f32 %v328_v21, %v321_v26  ;;  %v336_v29 = vmul.f32 %v332_v22, %v322_v27  ;;  %484 = vmatprep.subr.mxu0 %v1323_v3  ;;  %v304_v3 = vrot.slane %v1092_v32, %v1369_v11  ;;  %v233_v26 = vld [vmem:[%s1778_s5] sm:$0x3] }
  0x93   :  { %485 = vmatpush1.msra.mxu0 %v1311_v1  ;;  %v308_v1 = vrot.slane %v1092_v32, %v1371_v12 }
  0x94   :  { %v105_v33 = vpop.permute.xlu1 %104  ;;  %559 = vmatprep.subr.mxu1 %v336_v29  ;;  %v103_v34 = vpop.permute.xlu0 %102 }
  0x95   :  { %v107_v35 = vsel %vm106_vm4, %v103_v34, %v105_v33  ;;  %v108_v36 = vsel %vm106_vm4, %v105_v33, %v103_v34  ;;  %560 = vmatpush1.msra.mxu1 %v335_v28  ;;  %v238_v33 = vrot.slane %v233_v26, %v1369_v11  ;;  %v242_v34 = vrot.slane %v233_v26, %v1371_v12  ;;  %v635_v26 = vld [vmem:[%s1779_s6 + $0x18] sm:$0xff] }
  0x96   :  { %v122_v37 = vmul.f32 %v115_v30, %v108_v36  ;;  %v123_v38 = vmul.f32 %v119_v31, %v107_v35  ;;  %561 = vmatprep.subr.mxu1 %v1318_v2  ;;  %v405_v35 = vld [vmem:[%s1774_s1] sm:$0xff]  ;;  %v663_v36 = vld [vmem:[%s1779_s6 + $0xf8] sm:$0xff] }
  0x97   :  { %562 = vmatpush1.msra.mxu1 %v1306_v0  ;;  %v91_v0 = vrot.slane %v1082_v39, %v1369_v11 }
  0x98   :  { %v296_v40 = vpop.permute.xlu1 %295  ;;  %486 = vmatprep.subr.mxu0 %v123_v38  ;;  %v294_v41 = vpop.permute.xlu0 %293 }
  0x99   :  { %v297_v42 = vsel %vm106_vm4, %v294_v41, %v296_v40  ;;  %v298_v43 = vsel %vm106_vm4, %v296_v40, %v294_v41  ;;  %487 = vmatpush1.msra.mxu0 %v122_v37  ;;  %v646_v41 = vld [vmem:[%s1779_s6 + $0x70] sm:$0xff] }
  0x9a   :  { %v311_v44 = vmul.f32 %v304_v3, %v298_v43  ;;  %v312_v2 = vmul.f32 %v308_v1, %v297_v42  ;;  %v647_v3 = vld [vmem:[%s1779_s6 + $0x78] sm:$0xff]  ;;  %v662_v1 = vld [vmem:[%s1779_s6 + $0xf0] sm:$0xff]  ;;  %v661_v42 = vld [vmem:[%s1779_s6 + $0xe8] sm:$0xff] }
  0x9b   :  { %v695_v43 = vld [vmem:[%s1779_s6 + $0x1f8] sm:$0xff] }
  0x9c   :  { %v81_v47 = vpop.permute.xlu1 %80  ;;  %563 = vmatprep.subr.mxu1 %v312_v2  ;;  %v79_v48 = vpop.permute.xlu0 %78  ;;  %v679_v2 = vld [vmem:[%s1779_s6 + $0x178] sm:$0xff] }
  0x9d   :  { %v83_v49 = vsel %vm82_vm5, %v79_v48, %v81_v47  ;;  %v84_v50 = vsel %vm82_vm5, %v81_v47, %v79_v48  ;;  %564 = vmatpush1.msra.mxu1 %v311_v44  ;;  %v645_v44 = vld [vmem:[%s1779_s6 + $0x68] sm:$0xff]  ;;  %v678_v47 = vld [vmem:[%s1779_s6 + $0x170] sm:$0xff]  ;;  %v659_v48 = vld [vmem:[%s1779_s6 + $0xd8] sm:$0xff] }
  0x9e   :  { %v98_v51 = vmul.f32 %v91_v0, %v84_v50  ;;  %v99_v52 = vmul.f32 %v95_v45, %v83_v49  ;;  %v660_v0 = vld [vmem:[%s1779_s6 + $0xe0] sm:$0xff]  ;;  %v694_v45 = vld [vmem:[%s1779_s6 + $0x1f0] sm:$0xff]  ;;  %v693_v49 = vld [vmem:[%s1779_s6 + $0x1e8] sm:$0xff] }
  0x9f   :  { %v643_v50 = vld [vmem:[%s1779_s6 + $0x58] sm:$0xff] }
  0xa0   :  { %v274_v56 = vpop.permute.xlu1 %273  ;;  %488 = vmatprep.subr.mxu0 %v99_v52  ;;  %v272_v57 = vpop.permute.xlu0 %271  ;;  %v658_v52 = vld [vmem:[%s1779_s6 + $0xd0] sm:$0xff] }
  0xa1   :  { %v275_v58 = vsel %vm82_vm5, %v272_v57, %v274_v56  ;;  %v276_v59 = vsel %vm82_vm5, %v274_v56, %v272_v57  ;;  %489 = vmatpush1.msra.mxu0 %v98_v51  ;;  %v677_v51 = vld [vmem:[%s1779_s6 + $0x168] sm:$0xff]  ;;  %v691_v57 = vld [vmem:[%s1779_s6 + $0x1d8] sm:$0xff] }
  0xa2   :  { %v289_v60 = vmul.f32 %v282_v53, %v276_v59  ;;  %v290_v61 = vmul.f32 %v286_v54, %v275_v58  ;;  %v692_v53 = vld [vmem:[%s1779_s6 + $0x1e0] sm:$0xff]  ;;  %v642_v54 = vld [vmem:[%s1779_s6 + $0x50] sm:$0xff]  ;;  %v657_v56 = vld [vmem:[%s1779_s6 + $0xc8] sm:$0xff] }
  0xa3   :  { %v641_v58 = vld [vmem:[%s1779_s6 + $0x48] sm:$0xff]  ;;  %v675_v59 = vld [vmem:[%s1779_s6 + $0x158] sm:$0xff] }
  0xa4   :  { %v57_v6 = vpop.permute.xlu1 %56  ;;  %565 = vmatprep.subr.mxu1 %v290_v61  ;;  %v55_v7 = vpop.permute.xlu0 %54  ;;  %v690_v61 = vld [vmem:[%s1779_s6 + $0x1d0] sm:$0xff] }
  0xa5   :  { %v59_v8 = vsel %vm58_vm6, %v55_v7, %v57_v6  ;;  %v60_v9 = vsel %vm58_vm6, %v57_v6, %v55_v7  ;;  %566 = vmatpush1.msra.mxu1 %v289_v60  ;;  %v656_v60 = vld [vmem:[%s1779_s6 + $0xc0] sm:$0xff]  ;;  %v689_v6 = vld [vmem:[%s1779_s6 + $0x1c8] sm:$0xff]  ;;  %v639_v7 = vld [vmem:[%s1779_s6 + $0x38] sm:$0xff] }
  0xa6   :  { %v74_v13 = vmul.f32 %v67_v62, %v60_v9  ;;  %v75_v14 = vmul.f32 %v71_v63, %v59_v8  ;;  %v640_v62 = vld [vmem:[%s1779_s6 + $0x40] sm:$0xff]  ;;  %v674_v63 = vld [vmem:[%s1779_s6 + $0x150] sm:$0xff]  ;;  %v673_v8 = vld [vmem:[%s1779_s6 + $0x148] sm:$0xff] }
  0xa7   :  { %v654_v9 = vld [vmem:[%s1779_s6 + $0xb0] sm:$0xff] }
  0xa8   :  { %v252_v18 = vpop.permute.xlu1 %251  ;;  %490 = vmatprep.subr.mxu0 %v75_v14  ;;  %v250_v19 = vpop.permute.xlu0 %249  ;;  %v638_v14 = vld [vmem:[%s1779_s6 + $0x30] sm:$0xff] }
  0xa9   :  { %v253_v20 = vsel %vm58_vm6, %v250_v19, %v252_v18  ;;  %v254_v21 = vsel %vm58_vm6, %v252_v18, %v250_v19  ;;  %491 = vmatpush1.msra.mxu0 %v74_v13  ;;  %v688_v13 = vld [vmem:[%s1779_s6 + $0x1c0] sm:$0xff]  ;;  %v637_v18 = vld [vmem:[%s1779_s6 + $0x28] sm:$0xff]  ;;  %v671_v19 = vld [vmem:[%s1779_s6 + $0x138] sm:$0xff] }
  0xaa   :  { %v267_v22 = vmul.f32 %v260_v15, %v254_v21  ;;  %v268_v23 = vmul.f32 %v264_v16, %v253_v20  ;;  %v672_v15 = vld [vmem:[%s1779_s6 + $0x140] sm:$0xff]  ;;  %v653_v16 = vld [vmem:[%s1779_s6 + $0xa8] sm:$0xff]  ;;  %v686_v21 = vld [vmem:[%s1779_s6 + $0x1b0] sm:$0xff] }
  0xab   :  { %v652_v20 = vld [vmem:[%s1779_s6 + $0xa0] sm:$0xff] }
  0xac   :  { %v32_v27 = vpop.permute.xlu1 %31  ;;  %567 = vmatprep.subr.mxu1 %v268_v23  ;;  %v30_v28 = vpop.permute.xlu0 %29  ;;  %v670_v23 = vld [vmem:[%s1779_s6 + $0x130] sm:$0xff] }
  0xad   :  { %v36_v29 = vsel %vm35_vm7, %v30_v28, %v32_v27  ;;  %v37_v30 = vsel %vm35_vm7, %v32_v27, %v30_v28  ;;  %568 = vmatpush1.msra.mxu1 %v267_v22  ;;  %v636_v22 = vld [vmem:[%s1779_s6 + $0x20] sm:$0xff]  ;;  %v669_v27 = vld [vmem:[%s1779_s6 + $0x128] sm:$0xff]  ;;  %v650_v28 = vld [vmem:[%s1779_s6 + $0x90] sm:$0xff] }
  0xae   :  { %v50_v31 = vmul.f32 %v43_v24, %v37_v30  ;;  %v51_v32 = vmul.f32 %v47_v25, %v36_v29  ;;  %v651_v24 = vld [vmem:[%s1779_s6 + $0x98] sm:$0xff]  ;;  %v685_v25 = vld [vmem:[%s1779_s6 + $0x1a8] sm:$0xff]  ;;  %v684_v29 = vld [vmem:[%s1779_s6 + $0x1a0] sm:$0xff] }
  0xaf   :  { %v634_v30 = vld [vmem:[%s1779_s6 + $0x10] sm:$0xff] }
  0xb0   :  { %v230_v37 = vpop.permute.xlu1 %229  ;;  %492 = vmatprep.subr.mxu0 %v51_v32  ;;  %v228_v38 = vpop.permute.xlu0 %227  ;;  %v649_v32 = vld [vmem:[%s1779_s6 + $0x88] sm:$0xff] }
  0xb1   :  { %v231_v11 = vsel %vm35_vm7, %v228_v38, %v230_v37  ;;  %v232_v12 = vsel %vm35_vm7, %v230_v37, %v228_v38  ;;  %493 = vmatpush1.msra.mxu0 %v50_v31  ;;  %v668_v31 = vld [vmem:[%s1779_s6 + $0x120] sm:$0xff]  ;;  %v682_v37 = vld [vmem:[%s1779_s6 + $0x190] sm:$0xff] }
  0xb2   :  { %v245_v39 = vmul.f32 %v238_v33, %v232_v12  ;;  %v246_v40 = vmul.f32 %v242_v34, %v231_v11  ;;  %1097 = vmatmul.mubr.msk.f32.vlgmr.msra.gmra.mxu0 %vm455_vm8, %v405_v35  ;;  %1107 = vmatprep.subr.mxu0 %v663_v36  ;;  %v683_v33 = vld [vmem:[%s1779_s6 + $0x198] sm:$0xff]  ;;  %v633_v34 = vld [vmem:[%s1779_s6 + $0x8] sm:$0xff]  ;;  %v648_v36 = vld [vmem:[%s1779_s6 + $0x80] sm:$0xff] }
  0xb3   :  { %532 = vmatprep.mubr.f32.mxu0 %v1255_v4  ;;  %1108 = vmatpush3.msra.mxu0 %v647_v3  ;;  %v632_v38 = vld [vmem:[%s1779_s6] sm:$0xff]  ;;  %v666_v3 = vld [vmem:[%s1779_s6 + $0x110] sm:$0xff]  ;;  %v681_v11 = vld [vmem:[%s1779_s6 + $0x188] sm:$0xff] }
  0xb4   :  { %569 = vmatprep.subr.mxu1 %v246_v40  ;;  %1109 = vmatprep.subr.mxu0 %v662_v1  ;;  %v665_v12 = vld [vmem:[%s1779_s6 + $0x108] sm:$0xff]  ;;  %v680_v1 = vld [vmem:[%s1779_s6 + $0x180] sm:$0xff] }
  0xb5   :  { %570 = vmatpush1.msra.mxu1 %v245_v39  ;;  %1110 = vmatpush3.msra.mxu0 %v646_v41  ;;  %v664_v39 = vld [vmem:[%s1779_s6 + $0x100] sm:$0xff] }
  0xb6   :  { %1098 = vmatmul.mubr.msk.f32.gmra.mxu0 %vm455_vm8, %v406_v10  ;;  %1099 = vmatmul.mubr.msk.f32.vlgmr.msra.gmra.mxu1 %vm455_vm8, %v405_v35  ;;  %v667_v35 = vld [vmem:[%s1779_s6 + $0x118] sm:$0xff] }
  0xb7   :  { %609 = vmatprep.mubr.f32.mxu1 %v1255_v4  ;;  %1111 = vmatprep.subr.mxu0 %v661_v42 }
  0xb8   :  { %1145 = vmatprep.subr.mxu1 %v695_v43  ;;  %1112 = vmatpush3.msra.mxu0 %v645_v44 }
  0xb9   :  { %1146 = vmatpush3.msra.mxu1 %v679_v2  ;;  %1113 = vmatprep.subr.mxu0 %v660_v0 }
  0xba   :  { %1100 = vmatmul.mubr.msk.f32.gmra.mxu1 %vm455_vm8, %v406_v10  ;;  %1147 = vmatprep.subr.mxu1 %v694_v45 }
  0xbb   :  { %1114 = vmatpush3.msra.mxu0 %v644_v46  ;;  %1148 = vmatpush3.msra.mxu1 %v678_v47 }
  0xbc   :  { %1115 = vmatprep.subr.mxu0 %v659_v48  ;;  %1149 = vmatprep.subr.mxu1 %v693_v49 }
  0xbd   :  { %1116 = vmatpush3.msra.mxu0 %v643_v50  ;;  %1150 = vmatpush3.msra.mxu1 %v677_v51  ;;  %v448_v40 = vpop.permute.xlu0 %447  ;;  %v453_v44 = vpop.permute.xlu1 %452 }
  0xbe   :  { %1117 = vmatprep.subr.mxu0 %v658_v52  ;;  %1151 = vmatprep.subr.mxu1 %v692_v53 }
  0xbf   :  { %1118 = vmatpush3.msra.mxu0 %v642_v54  ;;  %1152 = vmatpush3.msra.mxu1 %v676_v55 }
  0xc0   :  { %1119 = vmatprep.subr.mxu0 %v657_v56  ;;  %1153 = vmatprep.subr.mxu1 %v691_v57 }
  0xc1   :  { %1120 = vmatpush3.msra.mxu0 %v641_v58  ;;  %1154 = vmatpush3.msra.mxu1 %v675_v59 }
  0xc2   :  { %1121 = vmatprep.subr.mxu0 %v656_v60  ;;  %1155 = vmatprep.subr.mxu1 %v690_v61 }
  0xc3   :  { %1122 = vmatpush3.msra.mxu0 %v640_v62  ;;  %1156 = vmatpush3.msra.mxu1 %v674_v63 }
  0xc4   :  { %1123 = vmatprep.subr.mxu0 %v655_v5  ;;  %1157 = vmatprep.subr.mxu1 %v689_v6 }
  0xc5   :  { %1124 = vmatpush3.msra.mxu0 %v639_v7  ;;  %1158 = vmatpush3.msra.mxu1 %v673_v8 }
  0xc6   :  { %1125 = vmatprep.subr.mxu0 %v654_v9  ;;  %1159 = vmatprep.subr.mxu1 %v688_v13  ;;  %v846_v13 = vld [vmem:[%s1776_s3] sm:$0x3]  ;;  %s1261_s3 = smov [#allocation4]  }
  0xc7   :  { %1126 = vmatpush3.msra.mxu0 %v638_v14  ;;  %1160 = vmatpush3.msra.mxu1 %v672_v15  ;;  %v922_v14 = vld [vmem:[%s1777_s4] sm:$0xff] }
  0xc8   :  { %1127 = vmatprep.subr.mxu0 %v653_v16  ;;  %1161 = vmatprep.subr.mxu1 %v687_v17 }
  0xc9   :  { %1128 = vmatpush3.msra.mxu0 %v637_v18  ;;  %1162 = vmatpush3.msra.mxu1 %v671_v19  ;;  %v923_v18 = vld [vmem:[%s1777_s4 + $0x8] sm:$0xff]  ;;  %s1070_s4 = sshll.u32 %s1261_s3, 4  ;;  %s1071_s4 = int_to_ptr.vmem [resolvable:$true] %s1070_s4 }
  0xca   :  { %1129 = vmatprep.subr.mxu0 %v652_v20  ;;  %1163 = vmatprep.subr.mxu1 %v686_v21  ;;  %s1227_s10 = scalar_lea.vmem %s1071_s4, 1024  ;;  %p1232_p1 = scmp.lt.s32.totalorder %s1071_s4, %s1071_s4 }
  0xcb   :  { %1130 = vmatpush3.msra.mxu0 %v636_v22  ;;  %1164 = vmatpush3.msra.mxu1 %v670_v23  ;;  %p1228_p0 = scmp.ne.s32.totalorder %s1071_s4, %s1227_s10  ;;  %p1233_p2 = scmp.lt.s32.totalorder %s1227_s10, %s1227_s10 }
  0xcc   :  { %1131 = vmatprep.subr.mxu0 %v651_v24  ;;  %1165 = vmatprep.subr.mxu1 %v685_v25 }
  0xcd   :  { %1132 = vmatpush3.msra.mxu0 %v635_v26  ;;  %1166 = vmatpush3.msra.mxu1 %v669_v27  ;;  %p1234_p3 = por %p1233_p2, %p1232_p1 }
  0xce   :  { %1133 = vmatprep.subr.mxu0 %v650_v28  ;;  %1167 = vmatprep.subr.mxu1 %v684_v29  ;;  %v1260_v28 = vmov 1  }
  0xcf   :  { %1134 = vmatpush3.msra.mxu0 %v634_v30  ;;  %1168 = vmatpush3.msra.mxu1 %v668_v31  ;;  %p1235_p4 = pnand %p1234_p3, %p1228_p0 }
  0xd0   :  { %1135 = vmatprep.subr.mxu0 %v649_v32  ;;  %1169 = vmatprep.subr.mxu1 %v683_v33 }
  0xd1   :  { %1136 = vmatpush3.msra.mxu0 %v633_v34  ;;  %1170 = vmatpush3.msra.mxu1 %v667_v35 }
  0xd2   :  { %1137 = vmatprep.subr.mxu0 %v648_v36  ;;  %1171 = vmatprep.subr.mxu1 %v682_v37 }
  0xd3   :  { %1138 = vmatpush3.msra.mxu0 %v632_v38  ;;  %1172 = vmatpush3.msra.mxu1 %v666_v3 }
  0xd4   :  { %1173 = vmatprep.subr.mxu1 %v681_v11  ;;  %1189 = vmatprep.subr.mxu0 %v1255_v4 }
  0xd5   :  { %1174 = vmatpush3.msra.mxu1 %v665_v12 }
  0xd6   :  { %1175 = vmatprep.subr.mxu1 %v680_v1 }
  0xd7   :  { %1176 = vmatpush3.msra.mxu1 %v664_v39 }
 0x172   :  { %v528_v41 = vpop.f32.mrf.mxu0 }
 0x173   :  { %v1726_v42 = vadd.f32 %v528_v41, %v448_v40 }
 0x174   :  { %v530_v10 = vpop.f32.mrf.mxu0 }
 0x175   :  { %v1728_v43 = vadd.f32 %v530_v10, %v448_v40 }
 0x176   :  { %v534_v2 = vpop.f32.mrf.mxu0  ;;  %v605_v0 = vpop.f32.mrf.mxu1 }
 0x177   :  { %760 = vmatprep.mubr.f32.mxu0 %v1728_v43  ;;  %v1732_v47 = vadd.f32 %v534_v2, %v453_v44  ;;  %v1738_v50 = vadd.f32 %v605_v0, %v448_v40 }
 0x178   :  { %v536_v45 = vpop.f32.mrf.mxu0  ;;  %v607_v46 = vpop.f32.mrf.mxu1  ;;  %761 = vmatmul.mubr.f32.vlgmr.msra.gmra.mxu0 %v1726_v42 }
 0x179   :  { %v1734_v48 = vadd.f32 %v536_v45, %v453_v44  ;;  %v1736_v49 = vadd.f32 %v607_v46, %v448_v40 }
 0x17a   :  { %v611_v51 = vpop.f32.mrf.mxu1 }
 0x17b   :  { %765 = vmatprep.mubr.f32.mxu0 %v1734_v48  ;;  %835 = vmatprep.mubr.f32.mxu1 %v1736_v49  ;;  %v1746_v54 = vadd.f32 %v611_v51, %v453_v44 }
 0x17c   :  { %v613_v52 = vpop.f32.mrf.mxu1  ;;  %766 = vmatmul.mubr.f32.gmra.mxu0 %v1732_v47  ;;  %836 = vmatmul.mubr.f32.vlgmr.msra.gmra.mxu1 %v1738_v50 }
 0x17d   :  { %v1744_v53 = vadd.f32 %v613_v52, %v453_v44  ;;  %1193 = vmatprep.mubr.msk.f32.mxu0 %vm1259_vm9, %v1255_v4 }
 0x17f   :  { %840 = vmatprep.mubr.f32.mxu1 %v1744_v53 }
 0x180   :  { %841 = vmatmul.mubr.f32.gmra.mxu1 %v1746_v54 }
 0x181   :  { %1198 = vmatprep.mubr.msk.f32.mxu1 %vm924_vm11, %v922_v14 }
 0x238   :  { %v1139_v55 = vpop.f32.mrf.mxu0 }
 0x23a   :  { %v1140_v56 = vpop.f32.mrf.mxu0 }
 0x23b   :  { %v1141_v7 = vadd.f32 %v1140_v56, %v1139_v55 }
 0x23c   :  { %v1142_v57 = vpop.f32.mrf.mxu0  ;;  %v1177_v58 = vpop.f32.mrf.mxu1 }
 0x23e   :  { %v1178_v59 = vpop.f32.mrf.mxu1  ;;  %v1143_v60 = vpop.f32.mrf.mxu0 }
 0x23f   :  { %v1144_v63 = vadd.f32 %v1143_v60, %v1142_v57  ;;  %v1179_v5 = vadd.f32 %v1178_v59, %v1177_v58 }
 0x240   :  { %v1180_v61 = vpop.f32.mrf.mxu1 }
 0x241   :  { %v838_v9 = vadd.f32 %v1179_v5, %v1141_v7 }
 0x242   :  { %v1181_v62 = vpop.f32.mrf.mxu1 }
 0x243   :  { %v1182_v6 = vadd.f32 %v1181_v62, %v1180_v61 }
 0x245   :  { %v843_v8 = vadd.f32 %v1182_v6, %v1144_v63 }
 0x247   :  { %1190 = vmatpush3.msra.mxu0 %v843_v8 }
 0x248   :  { %1191 = vmatprep.subr.mxu0 %v1255_v4 }
 0x249   :  { %1192 = vmatpush3.msra.mxu0 %v838_v9 }
 0x24a   :  { %1194 = vmatmul.mubr.msk.f32.vlgmr.msra.gmra.mxu0 %vm847_vm10, %v846_v13 }
 0x30a   :  { %v917_v15 = vpop.f32.mrf.mxu0 }
 0x30b   :  { %v921_v16 = vmax.f32 %v917_v15, 0.0 }
 0x30c   :  { %v1195_v17 = vpop.f32.mrf.mxu0 }
 0x30d   :  { %1196 = vmatprep.subr.msk.mxu1 %vm931_vm12, %v921_v16 }
 0x30e   :  { %1197 = vmatpush3.msk.msra.mxu1 %vm931_vm12, %v921_v16 }
 0x30f   :  { %1199 = vmatmul.mubr.msk.f32.vlgmr.msra.gmra.mxu1 %vm924_vm11, %v923_v18 }
 0x3cf   :  { %v1200_v4 = vpop.f32.mrf.mxu1 }
 0x3d0   :  { %v1106_v19 = vmul.f32 -1.442695, %v1200_v4 }
 0x3d1   :  { %v1001_v20 = vpop.f32.mrf.mxu1 }
 0x3d2   :  { %1219 = vpow2.f32 %v1106_v19  ;;  %v1105_v21 = vmul.f32 -1.442695, %v1001_v20 }
 0x3d4   :  { %1221 = vpow2.f32 %v1105_v21 }
 0x3df   :  { %v1220_v22 = vpop.eup %1219 }
 0x3e0   :  { %v1017_v23 = vadd.f32 1.0, %v1220_v22 }
 0x3e1   :  { %v1222_v24 = vpop.eup %1221 }
 0x3e2   :  { %1223 = vrcp.f32 %v1017_v23  ;;  %v1016_v25 = vadd.f32 1.0, %v1222_v24 }
 0x3e4   :  { %1225 = vrcp.f32 %v1016_v25 }
 0x3ef   :  { %v1224_v26 = vpop.eup %1223 }
 0x3f0   :  { %1033 = vperm.xlu0 %1215, %v1224_v26  }
 0x3f1   :  { %v1226_v27 = vpop.eup %1225 }
 0x3f2   :  { %1028 = vperm.xlu1 %1216, %v1226_v27  }
 0x3f4   :  { %1218 = vset.pattern.permute.xlu0 %v1260_v28 }
 0x3f5   :  { %1053 = vperm.xlu0 %1218, %v1224_v26  }
 0x3f6   :  { %1217 = vset.pattern.permute.xlu1 %v1260_v28 }
 0x3f7   :  { %1049 = vperm.xlu1 %1217, %v1226_v27  }
 0x46b   :  { %v1034_v29 = vpop.permute.xlu0 %1033 }
 0x46c   :  { %v1038_v30 = vmul.f32 %v1034_v29, %v1732_v47  ;;  %v1039_v31 = vmul.f32 %v1034_v29, %v1734_v48 }
 0x46d   :  { %v1029_v32 = vpop.permute.xlu1 %1028 }
 0x46e   :  { %1042 = vst [vmem:[#allocation4 + $0x10] sm:$0xff] %v1038_v30  ;;  %1043 = vst [vmem:[#allocation4 + $0x18] sm:$0xff] %v1039_v31  ;;  %v1036_v33 = vmul.f32 %v1029_v32, %v1726_v42  ;;  %v1037_v34 = vmul.f32 %v1029_v32, %v1728_v43 }
 0x470   :  { %1040 = vst [vmem:[#allocation4] sm:$0xff] %v1036_v33  ;;  %1041 = vst [vmem:[#allocation4 + $0x8] sm:$0xff] %v1037_v34  ;;  %v1054_v35 = vpop.permute.xlu0 %1053 }
 0x471   :  { %v1058_v36 = vmul.f32 %v1054_v35, %v1746_v54  ;;  %v1059_v37 = vmul.f32 %v1054_v35, %v1744_v53 }
 0x472   :  { %v1050_v38 = vpop.permute.xlu1 %1049 }
 0x473   :  { %1063 = vst [vmem:[#allocation4 + $0x30] sm:$0xff] %v1058_v36  ;;  %1064 = vst [vmem:[#allocation4 + $0x38] sm:$0xff] %v1059_v37  ;;  %v1056_v3 = vmul.f32 %v1050_v38, %v1738_v50  ;;  %v1057_v11 = vmul.f32 %v1050_v38, %v1736_v49 }
 0x475   :  { %1061 = vst [vmem:[#allocation4 + $0x20] sm:$0xff] %v1056_v3  ;;  %1062 = vst [vmem:[#allocation4 + $0x28] sm:$0xff] %v1057_v11 }
 0x476   :  { %1238 = shalt.err (!%p1235_p4)
}
 0x477   :  { %s1262_s11 = smov 256  }
 0x478   :  { %1076 = dma.vmem_to_hbm [thread:$0]  %s1071_s4, 1024, %s1780_s7, [#allocation5], %s1262_s11, %s1262_s11, %s1256_s14  }
 0x479   :  { %1247 = dma.done.wait [#allocation5], 1024  }
 0x47a   :  { %1248 = vsyncadd [#allocation5], 4294966272 }
 0x47b   :  { %1080 = vsyncpa [#allocation5], 1 }

</bundles_post_ra>
